<compile_context>
chip_gen: v6e
topology: v6e:2x2x1
jax: 0.10.0
libtpu: 0.0.40
codegen_flags: <defaults>
</compile_context>

<pallas_src>
import functools
import re

import jax
import jax.numpy as jnp
from jax.experimental import pallas as pl
from jax.experimental.pallas import tpu as pltpu

# ---------------------------------------------------------------------------
# Architecture
# ---------------------------------------------------------------------------
IN_FEATURES = 256
NUM_CELLS = [128, 64, 32, 16, 8]
OUT_FEATURES = 8
LAYER_DIMS = [IN_FEATURES] + NUM_CELLS + [OUT_FEATURES]   # 256,128,64,32,16,8,8
NUM_LAYERS = len(LAYER_DIMS) - 1                          # 6 Linear layers
OUT_DIMS = LAYER_DIMS[1:]                                 # per-layer widths


def _round_up(x, m):
    return ((x + m - 1) // m) * m


def _tpu_generation():
    """Best-effort TPU generation from device_kind (0 if unknown)."""
    try:
        kind = jax.devices()[0].device_kind.lower()
    except Exception:
        return 0
    m = re.search(r"\d+", kind)
    return int(m.group(0)) if m else 0


# ---------------------------------------------------------------------------
# Pallas kernel: full MLP chain for one (tile_m, 256) row tile.
# Weights are (in, out) bf16, resident in VMEM across the grid.
# Biases are packed into one (8, 128) f32 block; row l holds bias of layer l.
# ---------------------------------------------------------------------------
def _mlp_kernel(x_ref,
                w0_ref, w1_ref, w2_ref, w3_ref, w4_ref, w5_ref,
                b_ref, o_ref, *, act_dtype):
    # In-kernel bf16 cast of the f32 input tile (MXU operands), f32 accumulation.
    h = x_ref[...].astype(jnp.bfloat16)
    w_refs = (w0_ref, w1_ref, w2_ref, w3_ref, w4_ref, w5_ref)

    for layer in range(NUM_LAYERS):                 # unrolled at trace time
        width = OUT_DIMS[layer]
        acc = jnp.dot(h, w_refs[layer][...],
                      preferred_element_type=jnp.float32)
        acc = acc + b_ref[layer:layer + 1, :width]  # bias add in f32
        if layer < NUM_LAYERS - 1:
            # v6e/v7x: act_dtype=bf16 -> tanh on the bf16 EUP path, feeds the
            # next dot directly.  v5e: act_dtype=f32 -> f32 tanh, cast once.
            h = jnp.tanh(acc.astype(act_dtype)).astype(jnp.bfloat16)
        else:
            o_ref[...] = acc.astype(o_ref.dtype)    # final Linear: no activation


# ---------------------------------------------------------------------------
# Wrapper
# ---------------------------------------------------------------------------
def mlp_forward(desc, params, *, tile_m=None):
    """desc: (B, N, 256) float32 -> (B, N, 8) float32."""
    B, N, C = desc.shape
    assert C == IN_FEATURES
    M = B * N

    gen = _tpu_generation()
    bf16_act = gen >= 6                      # bf16 VALU/EUP only on v6e/v7x
    act_dtype = jnp.bfloat16 if bf16_act else jnp.float32
    if tile_m is None:
        tile_m = 8192 if gen >= 6 else 2048  # v5e: f32 intermediates, smaller tile

    if M <= 16:
        # single block covering the whole (tiny) array; block dim == full dim
        tile_m = M
    else:
        # keep the "parallel" grid >= 2 iterations so both v7x TensorCores work
        tile_m = min(tile_m, max(16, _round_up(pl.cdiv(M, 2), 16)))
    grid = (pl.cdiv(M, tile_m),)             # ragged last block handled by Pallas

    # No wrapper-side cast / pad: input read once from HBM as f32 by the kernel.
    x2d = desc.reshape(M, C)

    w_list, w_specs = [], []
    for w, _ in params:
        w_bf16 = w.astype(jnp.bfloat16)                       # (in, out) bf16
        w_list.append(w_bf16)
        # full-array block, constant index_map -> stays resident in VMEM
        w_specs.append(pl.BlockSpec(w_bf16.shape, lambda i: (0, 0)))

    # Pack all six biases into a single lane-aligned (8, 128) f32 block.
    b_packed = jnp.zeros((8, 128), jnp.float32)
    for layer, (_, b) in enumerate(params):
        b_packed = b_packed.at[layer, :b.shape[0]].set(b.astype(jnp.float32))
    b_spec = pl.BlockSpec((8, 128), lambda i: (0, 0))

    macs_per_row = sum(LAYER_DIMS[i] * LAYER_DIMS[i + 1] for i in range(NUM_LAYERS))
    tanh_per_row = sum(NUM_CELLS)
    weight_bytes = sum(w.size * 2 for w in w_list) + b_packed.size * 4
    cost = pl.CostEstimate(
        flops=2 * M * macs_per_row,
        transcendentals=M * tanh_per_row,
        bytes_accessed=M * C * 4 + weight_bytes + M * OUT_FEATURES * 4,
    )

    kernel = functools.partial(_mlp_kernel, act_dtype=act_dtype)

    out2d = pl.pallas_call(
        kernel,
        out_shape=jax.ShapeDtypeStruct((M, OUT_FEATURES), jnp.float32),
        grid=grid,
        in_specs=[pl.BlockSpec((tile_m, IN_FEATURES), lambda i: (i, 0))]
                 + w_specs + [b_spec],
        out_specs=pl.BlockSpec((tile_m, OUT_FEATURES), lambda i: (i, 0)),
        compiler_params=pltpu.CompilerParams(
            dimension_semantics=("parallel",),
            vmem_limit_bytes=48 * 1024 * 1024,   # < 64 MiB physical on v7x
        ),
        cost_estimate=cost,
    )(x2d, *w_list, b_packed)

    return out2d.reshape(B, N, OUT_FEATURES)


# ---------------------------------------------------------------------------
# Deterministic parameter init (matches nn.Linear default: U(-1/sqrt(fan_in), +))
# ---------------------------------------------------------------------------
def init_params(key):
    params = []
    for i in range(NUM_LAYERS):
        fan_in, fan_out = LAYER_DIMS[i], LAYER_DIMS[i + 1]
        key, kw, kb = jax.random.split(key, 3)
        bound = 1.0 / jnp.sqrt(fan_in)
        # stored as (in, out) == PyTorch weight.T
        w = jax.random.uniform(kw, (fan_in, fan_out), jnp.float32, -bound, bound)
        b = jax.random.uniform(kb, (fan_out,), jnp.float32, -bound, bound)
        params.append((w, b))
    return params


# pure-JAX f32 reference for a sanity check
def mlp_ref(desc, params):
    h = desc
    n = len(params)
    for i, (w, b) in enumerate(params):
        h = jnp.dot(h, w) + b
        if i < n - 1:
            h = jnp.tanh(h)
    return h


if __name__ == "__main__":
    key = jax.random.PRNGKey(0)
    kp, kx = jax.random.split(key)

    params = init_params(kp)

    # small deterministic input: batch=2, seq(keypoints)=8, channels=256
    desc = jax.random.normal(kx, (2, 8, IN_FEATURES), dtype=jnp.float32)

    out = mlp_forward(desc, params)
    out = jax.block_until_ready(out)

    ref = mlp_ref(desc, params)
    assert out.shape == (2, 8, OUT_FEATURES)
    # bf16 matmul operands (f32 accumulation) and bf16 tanh on v6e/v7x
    # => looser tolerance than a pure-f32 PyTorch reference.
    assert jnp.allclose(out, ref, atol=7.5e-2, rtol=0.0), "mismatch vs reference"

    print("KERNEL_OK")
</pallas_src>

<mosaic_0001>
module attributes {stable_mosaic.version = 11 : i64} {
  func.func @_mlp_kernel(%arg0: i32, %arg1: memref<16x256xf32, #tpu.memory_space<vmem>>, %arg2: memref<256x128xbf16, #tpu.memory_space<vmem>>, %arg3: memref<128x64xbf16, #tpu.memory_space<vmem>>, %arg4: memref<64x32xbf16, #tpu.memory_space<vmem>>, %arg5: memref<32x16xbf16, #tpu.memory_space<vmem>>, %arg6: memref<16x8xbf16, #tpu.memory_space<vmem>>, %arg7: memref<8x8xbf16, #tpu.memory_space<vmem>>, %arg8: memref<8x128xf32, #tpu.memory_space<vmem>>, %arg9: memref<16x8xf32, #tpu.memory_space<vmem>>) attributes {dimension_semantics = [#tpu.dimension_semantics<parallel>], iteration_bounds = array<i64: 1>, scalar_prefetch = 0 : i64, scratch_operands = 0 : i64, tpu.core_type = #tpu.core_type<tc>, window_params = [{transform_indices = @transform_0, window_bounds = array<i64: 16, 256>}, {pipeline_mode = #tpu.pipeline_mode<synchronous>, transform_indices = @transform_1, window_bounds = array<i64: 256, 128>}, {pipeline_mode = #tpu.pipeline_mode<synchronous>, transform_indices = @transform_2, window_bounds = array<i64: 128, 64>}, {pipeline_mode = #tpu.pipeline_mode<synchronous>, transform_indices = @transform_3, window_bounds = array<i64: 64, 32>}, {pipeline_mode = #tpu.pipeline_mode<synchronous>, transform_indices = @transform_4, window_bounds = array<i64: 32, 16>}, {pipeline_mode = #tpu.pipeline_mode<synchronous>, transform_indices = @transform_5, window_bounds = array<i64: 16, 8>}, {pipeline_mode = #tpu.pipeline_mode<synchronous>, transform_indices = @transform_6, window_bounds = array<i64: 8, 8>}, {pipeline_mode = #tpu.pipeline_mode<synchronous>, transform_indices = @transform_7, window_bounds = array<i64: 8, 128>}, {transform_indices = @transform_8, window_bounds = array<i64: 16, 8>}]} {
    %c0 = arith.constant 0 : index
    %c0_0 = arith.constant 0 : index
    %0 = vector.load %arg1[%c0, %c0_0] : memref<16x256xf32, #tpu.memory_space<vmem>>, vector<16x256xf32>
    %1 = arith.truncf %0 : vector<16x256xf32> to vector<16x256xbf16>
    %c0_1 = arith.constant 0 : index
    %c0_2 = arith.constant 0 : index
    %2 = vector.load %arg2[%c0_1, %c0_2] : memref<256x128xbf16, #tpu.memory_space<vmem>>, vector<256x128xbf16>
    %cst = arith.constant dense<0.000000e+00> : vector<16x128xf32>
    %3 = tpu.matmul %1, %2, %cst {dimension_numbers = #tpu.dot_dimension_numbers<[1], [0], [0], [1], [0, 0, 1, 1], [], []>} : vector<16x256xbf16>, vector<256x128xbf16>, vector<16x128xf32> -> vector<16x128xf32>
    %c0_3 = arith.constant 0 : index
    %c0_4 = arith.constant 0 : index
    %4 = vector.load %arg8[%c0_3, %c0_4] : memref<8x128xf32, #tpu.memory_space<vmem>>, vector<1x128xf32>
    %5 = vector.broadcast %4 : vector<1x128xf32> to vector<16x128xf32>
    %6 = arith.addf %3, %5 : vector<16x128xf32>
    %7 = math.tanh %6 : vector<16x128xf32>
    %8 = arith.truncf %7 : vector<16x128xf32> to vector<16x128xbf16>
    %c0_5 = arith.constant 0 : index
    %c0_6 = arith.constant 0 : index
    %9 = vector.load %arg3[%c0_5, %c0_6] : memref<128x64xbf16, #tpu.memory_space<vmem>>, vector<128x64xbf16>
    %cst_7 = arith.constant dense<0.000000e+00> : vector<16x64xf32>
    %10 = tpu.matmul %8, %9, %cst_7 {dimension_numbers = #tpu.dot_dimension_numbers<[1], [0], [0], [1], [0, 0, 1, 1], [], []>} : vector<16x128xbf16>, vector<128x64xbf16>, vector<16x64xf32> -> vector<16x64xf32>
    %c1 = arith.constant 1 : index
    %c0_8 = arith.constant 0 : index
    %11 = vector.load %arg8[%c1, %c0_8] : memref<8x128xf32, #tpu.memory_space<vmem>>, vector<1x64xf32>
    %12 = vector.broadcast %11 : vector<1x64xf32> to vector<16x64xf32>
    %13 = arith.addf %10, %12 : vector<16x64xf32>
    %14 = math.tanh %13 : vector<16x64xf32>
    %15 = arith.truncf %14 : vector<16x64xf32> to vector<16x64xbf16>
    %c0_9 = arith.constant 0 : index
    %c0_10 = arith.constant 0 : index
    %16 = vector.load %arg4[%c0_9, %c0_10] : memref<64x32xbf16, #tpu.memory_space<vmem>>, vector<64x32xbf16>
    %cst_11 = arith.constant dense<0.000000e+00> : vector<16x32xf32>
    %17 = tpu.matmul %15, %16, %cst_11 {dimension_numbers = #tpu.dot_dimension_numbers<[1], [0], [0], [1], [0, 0, 1, 1], [], []>} : vector<16x64xbf16>, vector<64x32xbf16>, vector<16x32xf32> -> vector<16x32xf32>
    %c2 = arith.constant 2 : index
    %c0_12 = arith.constant 0 : index
    %18 = vector.load %arg8[%c2, %c0_12] : memref<8x128xf32, #tpu.memory_space<vmem>>, vector<1x32xf32>
    %19 = vector.broadcast %18 : vector<1x32xf32> to vector<16x32xf32>
    %20 = arith.addf %17, %19 : vector<16x32xf32>
    %21 = math.tanh %20 : vector<16x32xf32>
    %22 = arith.truncf %21 : vector<16x32xf32> to vector<16x32xbf16>
    %c0_13 = arith.constant 0 : index
    %c0_14 = arith.constant 0 : index
    %23 = vector.load %arg5[%c0_13, %c0_14] : memref<32x16xbf16, #tpu.memory_space<vmem>>, vector<32x16xbf16>
    %cst_15 = arith.constant dense<0.000000e+00> : vector<16x16xf32>
    %24 = tpu.matmul %22, %23, %cst_15 {dimension_numbers = #tpu.dot_dimension_numbers<[1], [0], [0], [1], [0, 0, 1, 1], [], []>} : vector<16x32xbf16>, vector<32x16xbf16>, vector<16x16xf32> -> vector<16x16xf32>
    %c3 = arith.constant 3 : index
    %c0_16 = arith.constant 0 : index
    %25 = vector.load %arg8[%c3, %c0_16] : memref<8x128xf32, #tpu.memory_space<vmem>>, vector<1x16xf32>
    %26 = vector.broadcast %25 : vector<1x16xf32> to vector<16x16xf32>
    %27 = arith.addf %24, %26 : vector<16x16xf32>
    %28 = math.tanh %27 : vector<16x16xf32>
    %29 = arith.truncf %28 : vector<16x16xf32> to vector<16x16xbf16>
    %c0_17 = arith.constant 0 : index
    %c0_18 = arith.constant 0 : index
    %30 = vector.load %arg6[%c0_17, %c0_18] : memref<16x8xbf16, #tpu.memory_space<vmem>>, vector<16x8xbf16>
    %cst_19 = arith.constant dense<0.000000e+00> : vector<16x8xf32>
    %31 = tpu.matmul %29, %30, %cst_19 {dimension_numbers = #tpu.dot_dimension_numbers<[1], [0], [0], [1], [0, 0, 1, 1], [], []>} : vector<16x16xbf16>, vector<16x8xbf16>, vector<16x8xf32> -> vector<16x8xf32>
    %c4 = arith.constant 4 : index
    %c0_20 = arith.constant 0 : index
    %32 = vector.load %arg8[%c4, %c0_20] : memref<8x128xf32, #tpu.memory_space<vmem>>, vector<1x8xf32>
    %33 = vector.broadcast %32 : vector<1x8xf32> to vector<16x8xf32>
    %34 = arith.addf %31, %33 : vector<16x8xf32>
    %35 = math.tanh %34 : vector<16x8xf32>
    %36 = arith.truncf %35 : vector<16x8xf32> to vector<16x8xbf16>
    %c0_21 = arith.constant 0 : index
    %c0_22 = arith.constant 0 : index
    %37 = vector.load %arg7[%c0_21, %c0_22] : memref<8x8xbf16, #tpu.memory_space<vmem>>, vector<8x8xbf16>
    %cst_23 = arith.constant dense<0.000000e+00> : vector<16x8xf32>
    %38 = tpu.matmul %36, %37, %cst_23 {dimension_numbers = #tpu.dot_dimension_numbers<[1], [0], [0], [1], [0, 0, 1, 1], [], []>} : vector<16x8xbf16>, vector<8x8xbf16>, vector<16x8xf32> -> vector<16x8xf32>
    %c5 = arith.constant 5 : index
    %c0_24 = arith.constant 0 : index
    %39 = vector.load %arg8[%c5, %c0_24] : memref<8x128xf32, #tpu.memory_space<vmem>>, vector<1x8xf32>
    %40 = vector.broadcast %39 : vector<1x8xf32> to vector<16x8xf32>
    %41 = arith.addf %38, %40 : vector<16x8xf32>
    %c0_25 = arith.constant 0 : index
    %c0_26 = arith.constant 0 : index
    %42 = vector.load %arg9[%c0_25, %c0_26] : memref<16x8xf32, #tpu.memory_space<vmem>>, vector<16x8xf32>
    tpu.vector_store %arg9[%c0_25, %c0_26], %41 {strides = array<i32>} : memref<16x8xf32, #tpu.memory_space<vmem>>, vector<16x8xf32>,
    return
  }
  func.func @transform_0(%arg0: i32) -> (i32, i32) {
    %c0_i32 = arith.constant 0 : i32
    %c0_i32_0 = arith.constant 0 : i32
    return %arg0, %c0_i32 : i32, i32
  }
  func.func @transform_1(%arg0: i32) -> (i32, i32) {
    %c0_i32 = arith.constant 0 : i32
    %c0_i32_0 = arith.constant 0 : i32
    %c0_i32_1 = arith.constant 0 : i32
    return %c0_i32, %c0_i32_0 : i32, i32
  }
  func.func @transform_2(%arg0: i32) -> (i32, i32) {
    %c0_i32 = arith.constant 0 : i32
    %c0_i32_0 = arith.constant 0 : i32
    %c0_i32_1 = arith.constant 0 : i32
    return %c0_i32, %c0_i32_0 : i32, i32
  }
  func.func @transform_3(%arg0: i32) -> (i32, i32) {
    %c0_i32 = arith.constant 0 : i32
    %c0_i32_0 = arith.constant 0 : i32
    %c0_i32_1 = arith.constant 0 : i32
    return %c0_i32, %c0_i32_0 : i32, i32
  }
  func.func @transform_4(%arg0: i32) -> (i32, i32) {
    %c0_i32 = arith.constant 0 : i32
    %c0_i32_0 = arith.constant 0 : i32
    %c0_i32_1 = arith.constant 0 : i32
    return %c0_i32, %c0_i32_0 : i32, i32
  }
  func.func @transform_5(%arg0: i32) -> (i32, i32) {
    %c0_i32 = arith.constant 0 : i32
    %c0_i32_0 = arith.constant 0 : i32
    %c0_i32_1 = arith.constant 0 : i32
    return %c0_i32, %c0_i32_0 : i32, i32
  }
  func.func @transform_6(%arg0: i32) -> (i32, i32) {
    %c0_i32 = arith.constant 0 : i32
    %c0_i32_0 = arith.constant 0 : i32
    %c0_i32_1 = arith.constant 0 : i32
    return %c0_i32, %c0_i32_0 : i32, i32
  }
  func.func @transform_7(%arg0: i32) -> (i32, i32) {
    %c0_i32 = arith.constant 0 : i32
    %c0_i32_0 = arith.constant 0 : i32
    %c0_i32_1 = arith.constant 0 : i32
    return %c0_i32, %c0_i32_0 : i32, i32
  }
  func.func @transform_8(%arg0: i32) -> (i32, i32) {
    %c0_i32 = arith.constant 0 : i32
    %c0_i32_0 = arith.constant 0 : i32
    return %arg0, %c0_i32 : i32, i32
  }
}

</mosaic_0001>

<bundles_post_ra>
// kernel: tpu_custom_call.1
= control target key start
LH: loop header
LB: loop body
LE: loop exit
PB: predicated region body
PF: predicated region fallthrough
CT: control target
= control target key end

     0   :  { %13 = vsyncpa [#allocation3], 0  ;;  %s1085_s0 = inlined_call_operand.hbm [shape: f32[16,256], index: 0, kind: input, shape index: {}]   ;;  %s1086_s1 = inlined_call_operand.vmem [shape: bf16[256,128], index: 1, kind: input, shape index: {}]   ;;  %s1087_s2 = inlined_call_operand.vmem [shape: bf16[128,64], index: 2, kind: input, shape index: {}]   ;;  %s1088_s3 = inlined_call_operand.vmem [shape: bf16[64,32], index: 3, kind: input, shape index: {}]   ;;  %s1089_s4 = inlined_call_operand.vmem [shape: bf16[32,16], index: 4, kind: input, shape index: {}]   ;;  %s1090_s5 = inlined_call_operand.vmem [shape: bf16[16,8], index: 5, kind: input, shape index: {}]   ;;  %s1091_s6 = inlined_call_operand.hbm [shape: bf16[8,8], index: 6, kind: input, shape index: {}]   ;;  %s1092_s7 = inlined_call_operand.hbm [shape: f32[8,128], index: 7, kind: input, shape index: {}]   ;;  %s1093_s8 = inlined_call_operand.vmem [shape: f32[16,8], index: 8, kind: output, shape index: {}]  }
   0x1   :  { %14 = vsyncpa [#allocation5], 0  ;;  %s899_s27 = smov [#allocation4]   ;;  %s900_s29 = smov [#allocation2]  }
   0x2   :  { %s43_s28 = sshll.u32 %s899_s27, 4  ;;  %s20_s30 = sshll.u32 %s900_s29, 4  ;;  %s44_s28 = int_to_ptr.vmem [resolvable:$true] %s43_s28  ;;  %s21_s30 = int_to_ptr.vmem [resolvable:$true] %s20_s30 }
   0x3   :  { %s843_s9 = scalar_lea.vmem %s44_s28, 64  ;;  %p848_p1 = scmp.lt.s32.totalorder %s44_s28, %s44_s28 }
   0x4   :  { %p844_p0 = scmp.ne.s32.totalorder %s44_s28, %s843_s9  ;;  %p849_p2 = scmp.lt.s32.totalorder %s843_s9, %s843_s9 }
   0x6   :  { %p850_p3 = por %p849_p2, %p848_p1 }
   0x8   :  { %p851_p4 = pnand %p850_p3, %p844_p0 }
   0xa   :  { %854 = shalt.err (!%p851_p4)
}
   0xb   :  { %46 = dma.hbm_to_vmem [thread:$0]  %s1091_s6, 64, %s44_s28, [#allocation5]  }
   0xc   :  { %s863_s12 = scalar_lea.vmem %s21_s30, 512  ;;  %p868_p6 = scmp.lt.s32.totalorder %s21_s30, %s21_s30 }
   0xd   :  { %p864_p5 = scmp.ne.s32.totalorder %s21_s30, %s863_s12  ;;  %p869_p7 = scmp.lt.s32.totalorder %s863_s12, %s863_s12 }
   0xf   :  { %p870_p8 = por %p869_p7, %p868_p6 }
  0x11   :  { %p871_p9 = pnand %p870_p8, %p864_p5 }
  0x13   :  { %874 = shalt.err (!%p871_p9)
}
  0x14   :  { %s901_s13 = smov 256   ;;  %s902_s14 = smov 16  }
  0x15   :  { %26 = dma.hbm_to_vmem [thread:$0]  %s1085_s0, 512, %s21_s30, [#allocation3], %s901_s13, %s901_s13, %s902_s14  }
  0x16   :  { %s903_s17 = smov [#allocation6]  }
  0x17   :  { %s53_s18 = sshll.u32 %s903_s17, 4  ;;  %s54_s18 = int_to_ptr.vmem [resolvable:$true] %s53_s18 }
  0x18   :  { %s883_s19 = scalar_lea.vmem %s54_s18, 128  ;;  %p888_p11 = scmp.lt.s32.totalorder %s54_s18, %s54_s18 }
  0x19   :  { %p884_p10 = scmp.ne.s32.totalorder %s54_s18, %s883_s19  ;;  %p889_p12 = scmp.lt.s32.totalorder %s883_s19, %s883_s19 }
  0x1b   :  { %p890_p13 = por %p889_p12, %p888_p11 }
  0x1d   :  { %p891_p0 = pnand %p890_p13, %p884_p10 }
  0x1f   :  { %894 = shalt.err (!%p891_p0)
}
  0x20   :  { %56 = dma.hbm_to_vmem [thread:$0]  %s1092_s7, 128, %s54_s18, [#allocation5]  }
  0x21   :  { %895 = dma.done.wait [#allocation3], 512  }
  0x22   :  { %896 = vsyncadd [#allocation3], 4294966784 }
  0x23   :  { %897 = dma.done.wait [#allocation5], 192  }
  0x24   :  { %898 = vsyncadd [#allocation5], 4294967104  ;;  %v904_v0 = vmov 0.0   ;;  %v784_v1 = vld [vmem:[%s1086_s1 + $0x78] sm:$0xff]   ;;  %v786_v3 = vld [vmem:[%s1086_s1 + $0x70] sm:$0xff]   ;;  %vm905_vm0 = vmmov 0  }
  0x25   :  { %725 = vmatprep.subr.bf16.mxu1 %v904_v0  ;;  %v785_v2 = vld [vmem:[%s1086_s1 + $0x38] sm:$0xff]   ;;  %682 = vmatprep.subr.bf16.mxu0 %v784_v1  ;;  %v787_v4 = vld [vmem:[%s1086_s1 + $0x30] sm:$0xff]   ;;  %v788_v5 = vld [vmem:[%s1086_s1 + $0x68] sm:$0xff]   ;;  %vm400_vm1 = vcmask 523264   ;;  %vm469_vm2 = vcmask 261120   ;;  %vm530_vm3 = vcmask 130048  }
  0x26   :  { %683 = vmatpush3.bf16.msra.mxu0 %v785_v2  ;;  %v789_v6 = vld [vmem:[%s1086_s1 + $0x28] sm:$0xff]   ;;  %v790_v7 = vld [vmem:[%s1086_s1 + $0x60] sm:$0xff]   ;;  %v792_v9 = vld [vmem:[%s1086_s1 + $0x58] sm:$0xff]   ;;  %741 = vmatprep.mubr.msk.bf16.mxu1 %vm905_vm0, %v904_v0  ;;  %vm588_vm4 = vcmask 1043456   ;;  %vm584_vm5 = vcmask 64512  }
  0x27   :  { %684 = vmatprep.subr.bf16.mxu0 %v786_v3  ;;  %v791_v8 = vld [vmem:[%s1086_s1 + $0x20] sm:$0xff]   ;;  %v793_v10 = vld [vmem:[%s1086_s1 + $0x18] sm:$0xff]   ;;  %v794_v11 = vld [vmem:[%s1086_s1 + $0x50] sm:$0xff]  }
  0x28   :  { %v68_v12 = vld [vmem:[#allocation2 + $0x8] sm:$0xff]  ;;  %v70_v13 = vld [vmem:[#allocation2 + $0x18] sm:$0xff]  ;;  %v795_v14 = vld [vmem:[%s1086_s1 + $0x10] sm:$0xff]  }
  0x29   :  { %v72_v15 = vpack.c.bf16 %v70_v13, %v68_v12  ;;  %v796_v16 = vld [vmem:[%s1086_s1 + $0x48] sm:$0xff]   ;;  %v800_v17 = vld [vmem:[%s1087_s2 + $0x38] sm:$0xff]   ;;  %v798_v19 = vld [vmem:[%s1086_s1 + $0x40] sm:$0xff]  }
  0x2a   :  { %685 = vmatpush3.bf16.msra.mxu0 %v787_v4  ;;  %726 = vmatpush3.bf16.msra.mxu1 %v800_v17  ;;  %v797_v18 = vld [vmem:[%s1086_s1 + $0x8] sm:$0xff]   ;;  %v799_v20 = vld [vmem:[%s1086_s1] sm:$0xff]   ;;  %v69_v22 = vld [vmem:[#allocation2 + $0x10] sm:$0xff] }
  0x2b   :  { %686 = vmatprep.subr.bf16.mxu0 %v788_v5  ;;  %238 = vmatprep.mubr.bf16.mxu0 %v72_v15  ;;  %v67_v21 = vld [vmem:[#allocation2] sm:$0xff]  ;;  %v801_v24 = vld [vmem:[%s1087_s2 + $0x30] sm:$0xff]   ;;  %v802_v25 = vld [vmem:[%s1087_s2 + $0x28] sm:$0xff]  }
  0x2c   :  { %727 = vmatprep.subr.bf16.mxu1 %v904_v0  ;;  %v71_v23 = vpack.c.bf16 %v69_v22, %v67_v21  ;;  %v803_v26 = vld [vmem:[%s1087_s2 + $0x20] sm:$0xff]   ;;  %v804_v27 = vld [vmem:[%s1087_s2 + $0x18] sm:$0xff]   ;;  %v805_v28 = vld [vmem:[%s1087_s2 + $0x10] sm:$0xff]  }
  0x2d   :  { %v806_v29 = vld [vmem:[%s1087_s2 + $0x8] sm:$0xff]   ;;  %v807_v30 = vld [vmem:[%s1087_s2] sm:$0xff]   ;;  %v808_v43 = vld [vmem:[%s1088_s3 + $0x18] sm:$0xff]  }
  0x2e   :  { %687 = vmatpush3.bf16.msra.mxu0 %v789_v6  ;;  %728 = vmatpush3.bf16.msra.mxu1 %v801_v24  ;;  %v641_v33 = vld [vmem:[#allocation6] ss:$0 sm:$0xff]  ;;  %v809_v44 = vld [vmem:[%s1088_s3 + $0x10] sm:$0xff]   ;;  %v810_v45 = vld [vmem:[%s1088_s3 + $0x8] sm:$0xff]  }
  0x2f   :  { %688 = vmatprep.subr.bf16.mxu0 %v790_v7  ;;  %729 = vmatprep.subr.bf16.mxu1 %v904_v0  ;;  %v811_v46 = vld [vmem:[%s1088_s3] sm:$0xff]   ;;  %v812_v57 = vld [vmem:[%s1089_s4 + $0x8] sm:$0xff]  }
  0x30   :  { %v658_v47 = vld [vmem:[#allocation6 + $0x1] ss:$0 sm:$0xff]  ;;  %v667_v59 = vld [vmem:[#allocation6 + $0x2] ss:$0 sm:$0xff]  ;;  %v673_v7 = vld [vmem:[#allocation6 + $0x3] ss:$0 sm:$0xff] }
  0x31   :  { %v813_v58 = vld [vmem:[%s1089_s4] sm:$0xff]  }
  0x32   :  { %689 = vmatpush3.bf16.msra.mxu0 %v791_v8  ;;  %730 = vmatpush3.bf16.msra.mxu1 %v802_v25  ;;  %v814_v6 = vld [vmem:[%s1090_s5] sm:$0xff]  }
  0x33   :  { %690 = vmatprep.subr.bf16.mxu0 %v792_v9  ;;  %731 = vmatprep.subr.bf16.mxu1 %v904_v0 }
  0x36   :  { %691 = vmatpush3.bf16.msra.mxu0 %v793_v10  ;;  %732 = vmatpush3.bf16.msra.mxu1 %v803_v26 }
  0x37   :  { %692 = vmatprep.subr.bf16.mxu0 %v794_v11  ;;  %733 = vmatprep.subr.bf16.mxu1 %v904_v0 }
  0x3a   :  { %693 = vmatpush3.bf16.msra.mxu0 %v795_v14  ;;  %734 = vmatpush3.bf16.msra.mxu1 %v804_v27 }
  0x3b   :  { %694 = vmatprep.subr.bf16.mxu0 %v796_v16  ;;  %735 = vmatprep.subr.bf16.mxu1 %v904_v0 }
  0x3e   :  { %695 = vmatpush3.bf16.msra.mxu0 %v797_v18  ;;  %736 = vmatpush3.bf16.msra.mxu1 %v805_v28  ;;  %v677_v18 = vld [vmem:[#allocation6 + $0x4] ss:$0 sm:$0xff]  ;;  %v680_v28 = vld [vmem:[#allocation6 + $0x5] ss:$0 sm:$0xff] }
  0x3f   :  { %696 = vmatprep.subr.bf16.mxu0 %v798_v19  ;;  %737 = vmatprep.subr.bf16.mxu1 %v904_v0 }
  0x42   :  { %697 = vmatpush3.bf16.msra.mxu0 %v799_v20  ;;  %738 = vmatpush3.bf16.msra.mxu1 %v806_v29 }
  0x43   :  { %745 = vmatprep.subr.bf16.mxu0 %v904_v0  ;;  %739 = vmatprep.subr.bf16.mxu1 %v904_v0 }
  0x45   :  { %239 = vmatmul.mubr.bf16.vlgmr.msra.gmra.mxu0 %v71_v23 }
  0x46   :  { %753 = vmatprep.mubr.msk.bf16.mxu0 %vm905_vm0, %v904_v0  ;;  %740 = vmatpush3.bf16.msra.mxu1 %v807_v30 }
  0x47   :  { %757 = vmatprep.subr.bf16.mxu1 %v904_v0  ;;  %746 = vmatpush3.bf16.msra.mxu0 %v808_v43 }
  0x48   :  { %747 = vmatprep.subr.bf16.mxu0 %v904_v0 }
  0x4b   :  { %748 = vmatpush3.bf16.msra.mxu0 %v809_v44 }
  0x4c   :  { %749 = vmatprep.subr.bf16.mxu0 %v904_v0 }
  0x4f   :  { %750 = vmatpush3.bf16.msra.mxu0 %v810_v45 }
  0x50   :  { %751 = vmatprep.subr.bf16.mxu0 %v904_v0 }
  0x53   :  { %752 = vmatpush3.bf16.msra.mxu0 %v811_v46 }
  0x54   :  { %771 = vmatprep.subr.bf16.mxu0 %v904_v0 }
 0x105   :  { %v698_v31 = vpop.f32.mrf.mxu0 }
 0x107   :  { %v699_v32 = vpop.f32.mrf.mxu0 }
 0x108   :  { %v700_v34 = vadd.f32 %v699_v32, %v698_v31 }
 0x109   :  { %v701_v35 = vpop.f32.mrf.mxu0 }
 0x10a   :  { %v241_v36 = vadd.f32 %v700_v34, %v641_v33 }
 0x10b   :  { %v702_v37 = vpop.f32.mrf.mxu0 }
 0x10c   :  { %v703_v38 = vadd.f32 %v702_v37, %v701_v35  ;;  %815 = vtanh.f32 %v241_v36 }
 0x10e   :  { %v244_v39 = vadd.f32 %v703_v38, %v641_v33 }
 0x110   :  { %817 = vtanh.f32 %v244_v39 }
 0x119   :  { %v816_v40 = vpop.eup %815 }
 0x11d   :  { %v818_v41 = vpop.eup %817 }
 0x11e   :  { %v249_v42 = vpack.c.bf16 %v818_v41, %v816_v40 }
 0x120   :  { %742 = vmatmul.mubr.bf16.vlgmr.msra.gmra.mxu1 %v249_v42 }
 0x121   :  { %761 = vmatprep.mubr.msk.bf16.mxu1 %vm905_vm0, %v904_v0  ;;  %758 = vmatpush3.bf16.msra.mxu1 %v812_v57 }
 0x122   :  { %759 = vmatprep.subr.bf16.mxu1 %v904_v0 }
 0x125   :  { %760 = vmatpush3.bf16.msra.mxu1 %v813_v58 }
 0x126   :  { %765 = vmatprep.subr.bf16.mxu1 %v904_v0 }
 0x1e0   :  { %v353_v48 = vpop.f32.mrf.mxu1 }
 0x1e1   :  { %v354_v49 = vadd.f32 %v658_v47, %v353_v48 }
 0x1e2   :  { %v743_v50 = vpop.f32.mrf.mxu1 }
 0x1e3   :  { %819 = vtanh.f32 %v354_v49 }
 0x1e4   :  { %v356_v51 = vpop.f32.mrf.mxu1 }
 0x1e5   :  { %v357_v52 = vadd.f32 %v658_v47, %v356_v51 }
 0x1e6   :  { %v744_v53 = vpop.f32.mrf.mxu1 }
 0x1e7   :  { %821 = vtanh.f32 %v357_v52 }
 0x1f0   :  { %v820_v54 = vpop.eup %819 }
 0x1f4   :  { %v822_v55 = vpop.eup %821 }
 0x1f5   :  { %v362_v56 = vpack.c.bf16 %v822_v55, %v820_v54 }
 0x1f7   :  { %754 = vmatmul.mubr.msk.bf16.vlgmr.msra.gmra.mxu0 %vm400_vm1, %v362_v56 }
 0x1f8   :  { %773 = vmatprep.mubr.msk.bf16.mxu0 %vm905_vm0, %v904_v0 }
 0x2b7   :  { %v438_v60 = vpop.f32.mrf.mxu0 }
 0x2b8   :  { %v439_v61 = vadd.f32 %v667_v59, %v438_v60 }
 0x2b9   :  { %v755_v62 = vpop.f32.mrf.mxu0 }
 0x2ba   :  { %823 = vtanh.f32 %v439_v61 }
 0x2bb   :  { %v441_v63 = vpop.f32.mrf.mxu0 }
 0x2bc   :  { %v442_v1 = vadd.f32 %v667_v59, %v441_v63 }
 0x2bd   :  { %v756_v2 = vpop.f32.mrf.mxu0 }
 0x2be   :  { %825 = vtanh.f32 %v442_v1 }
 0x2c7   :  { %v824_v3 = vpop.eup %823 }
 0x2cb   :  { %v826_v4 = vpop.eup %825 }
 0x2cc   :  { %v447_v5 = vpack.c.bf16 %v826_v4, %v824_v3 }
 0x2ce   :  { %762 = vmatmul.mubr.msk.bf16.vlgmr.msra.gmra.mxu1 %vm469_vm2, %v447_v5 }
 0x2cf   :  { %767 = vmatprep.mubr.msk.bf16.mxu1 %vm905_vm0, %v904_v0  ;;  %766 = vmatpush3.bf16.msra.mxu1 %v814_v6  ;;  %v578_v0 = vld [vmem:[#allocation4] sm:$0xf] }
 0x2d0   :  { %v590_v17 = vsel %vm588_vm4, %v578_v0, 0 }
 0x2d1   :  { %772 = vmatpush3.bf16.msra.mxu0 %v590_v17 }
 0x38e   :  { %v507_v8 = vpop.f32.mrf.mxu1 }
 0x38f   :  { %v508_v9 = vadd.f32 %v673_v7, %v507_v8 }
 0x390   :  { %v763_v10 = vpop.f32.mrf.mxu1 }
 0x391   :  { %827 = vtanh.f32 %v508_v9 }
 0x392   :  { %v510_v11 = vpop.f32.mrf.mxu1 }
 0x393   :  { %v511_v12 = vadd.f32 %v673_v7, %v510_v11 }
 0x394   :  { %v764_v13 = vpop.f32.mrf.mxu1 }
 0x395   :  { %829 = vtanh.f32 %v511_v12 }
 0x39e   :  { %v828_v14 = vpop.eup %827 }
 0x3a2   :  { %v830_v15 = vpop.eup %829 }
 0x3a3   :  { %v516_v16 = vpack.c.bf16 %v830_v15, %v828_v14 }
 0x3a5   :  { %768 = vmatmul.mubr.msk.bf16.vlgmr.msra.gmra.mxu1 %vm530_vm3, %v516_v16 }
 0x465   :  { %v568_v19 = vpop.f32.mrf.mxu1 }
 0x466   :  { %v569_v20 = vadd.f32 %v677_v18, %v568_v19 }
 0x467   :  { %v769_v21 = vpop.f32.mrf.mxu1 }
 0x468   :  { %831 = vtanh.f32 %v569_v20 }
 0x469   :  { %v571_v22 = vpop.f32.mrf.mxu1 }
 0x46a   :  { %v572_v23 = vadd.f32 %v677_v18, %v571_v22 }
 0x46b   :  { %v770_v24 = vpop.f32.mrf.mxu1 }
 0x46c   :  { %833 = vtanh.f32 %v572_v23 }
 0x475   :  { %v832_v25 = vpop.eup %831 }
 0x479   :  { %v834_v26 = vpop.eup %833 }
 0x47a   :  { %v577_v27 = vpack.c.bf16 %v834_v26, %v832_v25 }
 0x47c   :  { %774 = vmatmul.mubr.msk.bf16.vlgmr.msra.gmra.mxu0 %vm584_vm5, %v577_v27 }
 0x53c   :  { %v626_v29 = vpop.f32.mrf.mxu0 }
 0x53d   :  { %v627_v30 = vadd.f32 %v680_v28, %v626_v29 }
 0x53e   :  { %v775_v31 = vpop.f32.mrf.mxu0 }
 0x53f   :  { %633 = vst.msk [vmem:[%s1093_s8] sm:$0xff] %vm584_vm5, %v627_v30 }
 0x540   :  { %v629_v32 = vpop.f32.mrf.mxu0 }
 0x541   :  { %v630_v33 = vadd.f32 %v680_v28, %v629_v32 }
 0x542   :  { %v776_v34 = vpop.f32.mrf.mxu0 }
 0x543   :  { %634 = vst.msk [vmem:[%s1093_s8 + $0x8] sm:$0xff] %vm584_vm5, %v630_v33 }
 0x544   :  { %639 = vsyncpa [#allocation3], 1 }
 0x545   :  { %640 = vsyncpa [#allocation5], 1 }

</bundles_post_ra>
